<compile_context>
chip_gen: v7x
topology: tpu7x:2x2x1
jax: 0.10.0
libtpu: 0.0.40
codegen_flags: <defaults>
</compile_context>

<pallas_src>
import functools

import jax
import jax.numpy as jnp
from jax import lax
from jax.experimental import pallas as pl
from jax.experimental.pallas import tpu as pltpu

_LANE = 128


def _round_up(x, m):
    return ((x + m - 1) // m) * m


def _linear_kernel(h_ref, w_ref, b_ref, o_ref, *, n_class, precision):
    # h_ref : (tb, H)   batch tile of activations (ragged tail handled by Pallas)
    # w_ref : (H, Cp)   transposed, lane-padded weight; VMEM-resident across steps
    # b_ref : (1, C)    bias, VMEM-resident
    # o_ref : (tb, C)   narrow output tile -> HBM write is exactly B*C elements
    acc = lax.dot_general(
        h_ref[...], w_ref[...],
        dimension_numbers=(((1,), (0,)), ((), ())),   # (tb,H) @ (H,Cp)
        preferred_element_type=jnp.float32,
        precision=precision,
    )
    o_ref[...] = (acc[:, :n_class] + b_ref[...].astype(jnp.float32)).astype(o_ref.dtype)


def logistic_regression_forward(h, w, b, *, block_rows=2048):
    """h: (B, n_hidden), w: (n_class, n_hidden), b: (n_class,) -> (B, n_class)."""
    B, H = h.shape
    C = w.shape[0]
    dtype = h.dtype
    itemsize = jnp.dtype(dtype).itemsize

    # Parameters follow the activation dtype (bf16 path streams half the bytes
    # of h; accumulation stays f32 inside the kernel).
    w = w.astype(dtype)
    b = b.astype(dtype)

    # MXU/lane-friendly padded class width for the *resident* weight only.
    # (Do not pad beyond 128: the kernel is memory-bound, not MXU-bound.)
    Cp = _round_up(max(C, _LANE), _LANE)

    # One-time wrapper transpose + pad of the weight: (C,H) -> (H,Cp).  Tiny
    # (C*H elements), amortized over all B rows; guarantees a clean
    # weight-stationary MXU feed with no per-step XLU transpose.
    w_t = jnp.pad(w, ((0, Cp - C), (0, 0))).T          # (H, Cp)
    b2 = b.reshape(1, C)

    # Sublane granularity per dtype packing (f32:8, bf16:16, int8/fp8:32).
    sub = {4: 8, 2: 16, 1: 32}.get(itemsize, 8)

    # ---- VMEM-aware batch tile ------------------------------------------
    # usage ~= 2*tb*H (h tile, dbl buffered) + 2*H*Cp (resident weight)
    #        + 2*tb*Cp (out tile, lane-padded VMEM layout) + bias  [elements]
    budget_bytes = 24 * 1024 * 1024            # safe on v7x (64 MiB physical)
    fixed_bytes = (2 * H * Cp + 2 * Cp) * itemsize
    per_row_bytes = 2 * (H + Cp) * itemsize
    tb = min(block_rows, max(sub, (budget_bytes - fixed_bytes) // max(per_row_bytes, 1)))
    tb = max(sub, (tb // sub) * sub)
    # Guarantee >=2 grid steps so v7x's two TensorCores can split the batch
    # axis (harmless ~0.35us extra step on 1-TC v5e/v6e).
    tb = min(tb, max(sub, _round_up(pl.cdiv(B, 2), sub)))

    grid = (pl.cdiv(B, tb),)                   # no jnp.pad of h: ragged tail OK

    est_vmem = fixed_bytes + tb * per_row_bytes
    vmem_limit = int(max(32 * 1024 * 1024, min(est_vmem + (8 << 20), 48 * 1024 * 1024)))

    kernel = functools.partial(
        _linear_kernel,
        n_class=C,
        precision=lax.Precision.HIGHEST if dtype == jnp.float32 else None,
    )

    return pl.pallas_call(
        kernel,
        out_shape=jax.ShapeDtypeStruct((B, C), dtype),
        grid_spec=pltpu.PrefetchScalarGridSpec(
            num_scalar_prefetch=0,
            grid=grid,
            in_specs=[
                pl.BlockSpec((tb, H), lambda i: (i, 0)),   # stream batch tiles
                pl.BlockSpec((H, Cp), lambda i: (0, 0)),   # weight stays resident
                pl.BlockSpec((1, C), lambda i: (0, 0)),    # bias stays resident
            ],
            # Narrow (tb, C) output block: last dim equals the full array dim,
            # so HBM writeback is exactly B*C elements and contiguous.
            out_specs=pl.BlockSpec((tb, C), lambda i: (i, 0)),
        ),
        compiler_params=pltpu.CompilerParams(
            dimension_semantics=("parallel",),             # batch axis, 2-TC split on v7x
            vmem_limit_bytes=vmem_limit,
        ),
    )(h, w_t, b2)


def init_params(key, n_hidden, n_class):
    """Init matching the PyTorch module's __init__ shapes.

    weight: (n_class, n_hidden), xavier_normal_ => std = sqrt(2/(fan_in+fan_out))
    bias:   (n_class,), PyTorch Linear default uniform(-1/sqrt(fan_in), 1/sqrt(fan_in))
    """
    kw, kb = jax.random.split(key)
    std = (2.0 / (n_hidden + n_class)) ** 0.5
    w = std * jax.random.normal(kw, (n_class, n_hidden), dtype=jnp.float32)
    bound = 1.0 / (n_hidden ** 0.5)
    b = jax.random.uniform(kb, (n_class,), minval=-bound, maxval=bound,
                           dtype=jnp.float32)
    return w, b


if __name__ == "__main__":
    key = jax.random.PRNGKey(0)
    k_h, k_p, k_h2, k_p2, k_h3, k_p3 = jax.random.split(key, 6)

    # 1) Small shapes consistent with the module.
    n_hidden, n_class, batch = 32, 8, 16
    h = jax.random.normal(k_h, (batch, n_hidden), dtype=jnp.float32)
    w, b = init_params(k_p, n_hidden, n_class)
    out = logistic_regression_forward(h, w, b)
    jax.block_until_ready(out)
    ref = h @ w.T + b
    assert out.shape == (batch, n_class)
    assert jnp.allclose(out, ref, atol=1e-5, rtol=1e-5)

    # 2) Multi-step grid + ragged batch tail (400 = 3*128 + 16), odd n_class.
    n_hidden2, n_class2, batch2 = 256, 7, 400
    h2 = jax.random.normal(k_h2, (batch2, n_hidden2), dtype=jnp.float32)
    w2, b2 = init_params(k_p2, n_hidden2, n_class2)
    out2 = logistic_regression_forward(h2, w2, b2, block_rows=128)  # grid=(4,)
    jax.block_until_ready(out2)
    ref2 = h2 @ w2.T + b2
    assert out2.shape == (batch2, n_class2)
    assert jnp.allclose(out2, ref2, atol=1e-4, rtol=1e-4)

    # 3) bf16 activation path (half the streamed HBM bytes; f32 accumulate).
    n_hidden3, n_class3, batch3 = 128, 5, 64
    h3 = jax.random.normal(k_h3, (batch3, n_hidden3), dtype=jnp.float32).astype(jnp.bfloat16)
    w3, b3 = init_params(k_p3, n_hidden3, n_class3)
    out3 = logistic_regression_forward(h3, w3, b3)
    jax.block_until_ready(out3)
    ref3 = h3.astype(jnp.float32) @ w3.T + b3
    assert out3.shape == (batch3, n_class3)
    assert jnp.allclose(out3.astype(jnp.float32), ref3, atol=6e-2, rtol=5e-2)

    print("KERNEL_OK")
</pallas_src>

<mosaic_0001>
module attributes {stable_mosaic.version = 11 : i64} {
  func.func @_linear_kernel(%arg0: i32, %arg1: memref<8x32xf32, #tpu.memory_space<vmem>>, %arg2: memref<32x128xf32, #tpu.memory_space<vmem>>, %arg3: memref<1x8xf32, #tpu.memory_space<vmem>>, %arg4: memref<8x8xf32, #tpu.memory_space<vmem>>) attributes {dimension_semantics = [#tpu.dimension_semantics<parallel>], iteration_bounds = array<i64: 2>, scalar_prefetch = 0 : i64, scratch_operands = 0 : i64, tpu.core_type = #tpu.core_type<tc>, window_params = [{transform_indices = @transform_0, window_bounds = array<i64: 8, 32>}, {pipeline_mode = #tpu.pipeline_mode<synchronous>, transform_indices = @transform_1, window_bounds = array<i64: 32, 128>}, {pipeline_mode = #tpu.pipeline_mode<synchronous>, transform_indices = @transform_2, window_bounds = array<i64: 1, 8>}, {transform_indices = @transform_3, window_bounds = array<i64: 8, 8>}]} {
    %c0 = arith.constant 0 : index
    %c0_0 = arith.constant 0 : index
    %0 = vector.load %arg1[%c0, %c0_0] : memref<8x32xf32, #tpu.memory_space<vmem>>, vector<8x32xf32>
    %c0_1 = arith.constant 0 : index
    %c0_2 = arith.constant 0 : index
    %1 = vector.load %arg2[%c0_1, %c0_2] : memref<32x128xf32, #tpu.memory_space<vmem>>, vector<32x128xf32>
    %cst = arith.constant dense<0.000000e+00> : vector<8x128xf32>
    %2 = tpu.matmul %0, %1, %cst {dimension_numbers = #tpu.dot_dimension_numbers<[1], [0], [0], [1], [0, 0, 1, 1], [], []>, precision = #tpu.contract_precision<fp32>} : vector<8x32xf32>, vector<32x128xf32>, vector<8x128xf32> -> vector<8x128xf32>
    %3 = vector.extract_strided_slice %2 {offsets = [0, 0], sizes = [8, 8], strides = [1, 1]} : vector<8x128xf32> to vector<8x8xf32>
    %c0_3 = arith.constant 0 : index
    %c0_4 = arith.constant 0 : index
    %4 = vector.load %arg3[%c0_3, %c0_4] : memref<1x8xf32, #tpu.memory_space<vmem>>, vector<1x8xf32>
    %5 = vector.broadcast %4 : vector<1x8xf32> to vector<8x8xf32>
    %6 = arith.addf %3, %5 : vector<8x8xf32>
    %c0_5 = arith.constant 0 : index
    %c0_6 = arith.constant 0 : index
    %7 = vector.load %arg4[%c0_5, %c0_6] : memref<8x8xf32, #tpu.memory_space<vmem>>, vector<8x8xf32>
    tpu.vector_store %arg4[%c0_5, %c0_6], %6 {strides = array<i32>} : memref<8x8xf32, #tpu.memory_space<vmem>>, vector<8x8xf32>,
    return
  }
  func.func @transform_0(%arg0: i32) -> (i32, i32) {
    %c0_i32 = arith.constant 0 : i32
    %c0_i32_0 = arith.constant 0 : i32
    return %arg0, %c0_i32 : i32, i32
  }
  func.func @transform_1(%arg0: i32) -> (i32, i32) {
    %c0_i32 = arith.constant 0 : i32
    %c0_i32_0 = arith.constant 0 : i32
    %c0_i32_1 = arith.constant 0 : i32
    return %c0_i32, %c0_i32_0 : i32, i32
  }
  func.func @transform_2(%arg0: i32) -> (i32, i32) {
    %c0_i32 = arith.constant 0 : i32
    %c0_i32_0 = arith.constant 0 : i32
    %c0_i32_1 = arith.constant 0 : i32
    return %c0_i32, %c0_i32_0 : i32, i32
  }
  func.func @transform_3(%arg0: i32) -> (i32, i32) {
    %c0_i32 = arith.constant 0 : i32
    %c0_i32_0 = arith.constant 0 : i32
    return %arg0, %c0_i32 : i32, i32
  }
}

</mosaic_0001>

<bundles_post_ra>
// kernel: tpu_custom_call.1
= control target key start
LH: loop header
LB: loop body
LE: loop exit
PB: predicated region body
PF: predicated region fallthrough
CT: control target
= control target key end

     0   :  { %8 = vsyncpa [#allocation3], 0  ;;  %s1271_s0 = inlined_call_operand.hbm [shape: f32[16,32], index: 0, kind: input, shape index: {}]   ;;  %s1272_s1 = inlined_call_operand.hbm [shape: f32[32,128], index: 1, kind: input, shape index: {}]   ;;  %s1273_s2 = inlined_call_operand.vmem [shape: f32[1,8], index: 2, kind: input, shape index: {}]   ;;  %s1274_s3 = inlined_call_operand.vmem [shape: f32[16,8], index: 3, kind: output, shape index: {}]  }
   0x1   :  { %10 = vsyncpa [#allocation3 + $0x1], 0 }
   0x2   :  { %11 = vsyncpa [#allocation5], 0  ;;  %s1105_s12 = smov 0   ;;  %s1107_s13 = smov 0  }
   0x3   :  { %s1109_s14 = smov 0   ;;  %s1111_s15 = smov 0  }
   0x4 LB: > { %s1124_s16 = sadd.s32 4294967295, %s1076_s15   ;;  %p37_p0 = scmp.ne.s32.totalorder %s1068_s13, %s1064_s12  ;;  %s1076_s15 = sphi %s1111_s15, %s1289_s15   ;;  %s1072_s14 = sphi %s1109_s14, %s1288_s14   ;;  %s1068_s13 = sphi %s1107_s13, %s1287_s13   ;;  %s1064_s12 = sphi %s1105_s12, %s1286_s12  }
   0x5   : > { %p1275_p1 = scmp.eq.s32.totalorder %s1124_s16, 0  ;;  %p781_p2 = scmp.ge.s32.totalorder %s1076_s15, 1 }
   0x6   : > { %p116_p3 = scmp.lt.s32.totalorder %s1076_s15, 3  ;;  %s1078_s19 = smov [#allocation4]  }
   0x7   : > { %p1132_p4 = por %p1275_p1, %p37_p0  ;;  %s128_s20 = sshll.u32 %s1078_s19, 4  ;;  %s129_s20 = int_to_ptr.vmem [resolvable:$true] %s128_s20 }
   0x8   : > { %p1136_p5 = pnand %p781_p2, %p116_p3  ;;  %s1149_s22 = sadd.s32 1, %s1076_s15  }
   0x9   : > { %s1278_s17 = scalar_select %p1132_p4, 1, 0 }
   0xa   : > { %s1279_s18 = scalar_select %p1136_p5, 1, 0 }
   0xb   : > { %p931_p6 = pneg %p1136_p5  ;;  %s24_s23 = sadd.s32 1, %s1072_s14 }
   0xc   : > { %s21_s24 = ssub.s32 %s1076_s15, %s1149_s22  ;;  %s980_s27 = scalar_lea.hbm %s1272_s1, 512 }
   0xd   : > { %p1144_p7 = pnand %p931_p6, %p1275_p1  ;;  %p981_p8 = scmp.ne.s32.totalorder %s1272_s1, %s980_s27 }
   0xe   : > { %p987_p12 = scmp.lt.u32.totalorder %s980_s27, %s1272_s1 }
   0xf   : > { %p982_p9 = pneg %p1144_p7 }
  0x11   : > { %p983_p10 = pnand %p982_p9, %p981_p8 }
  0x13   : > { %p984_p11 = pneg %p983_p10 }
  0x15   : > { %p989_p13 = pnand %p987_p12, %p984_p11 }
  0x17   : > { %992 = shalt.err (!%p989_p13)
}
  0x18   : > { %s993_s5 = scalar_lea.vmem %s129_s20, 512  ;;  %p1001_p6 = scmp.lt.s32.totalorder %s129_s20, %s129_s20 }
  0x19   : > { %p994_p0 = scmp.ne.s32.totalorder %s129_s20, %s993_s5  ;;  %p1002_p1 = scmp.lt.s32.totalorder %s993_s5, %s993_s5 }
  0x1b   : > { %p996_p2 = pnand %p994_p0, %p982_p9  ;;  %p1003_p4 = por %p1002_p1, %p1001_p6 }
  0x1d   : > { %p997_p3 = pneg %p996_p2 }
  0x1f   : > { %p1004_p5 = pnand %p1003_p4, %p997_p3 }
  0x21   : > { %1007 = shalt.err (!%p1004_p5)
}
  0x22   : > { %s1079_s6 = smov 128   ;;  %s1080_s7 = smov 8  }
  0x23   : > { %934 = dma.hbm_to_vmem [thread:$0]  (!%p1144_p7), %s1272_s1, 512, %s129_s20, [#allocation5], %s1079_s6, %s1079_s6, %s1080_s7  }
  0x24   : > { %p22_p8 = scmp.eq.s32.totalorder %s21_s24, 0  ;;  %p31_p9 = scmp.ne.s32.totalorder %s1072_s14, %s1068_s13 }
  0x25   : > { %p32_p1 = scmp.eq.s32.totalorder %s1076_s15, 0  ;;  %p940_p4 = scmp.lt.s32.totalorder %s1076_s15, 2 }
  0x26   : > { %s1175_s10 = scalar_select %p22_p8, %s1072_s14, %s24_s23  }
  0x27   : > { %p33_p5 = por %p32_p1, %p31_p9  ;;  %s145_s11 = sand.u32 1, %s1072_s14  }
  0x28   : > { %s784_s12 = sshll.u32 %s145_s11, 3  ;;  %s785_s19 = sshll.u32 %s1076_s15, 7 }
  0x29   : > { %s1182_s27 = scalar_lea.hbm %s1271_s0, %s785_s19  ;;  %s149_s20 = scalar_lea.vmem [#allocation2], %s784_s12 }
  0x2a   : > { %s156_s21 = sshll.u32 %s149_s20, 4  ;;  %p1186_p7 = pnand %p940_p4, %p33_p5  ;;  %s1184_s21 = int_to_ptr.vmem [resolvable:$true] %s156_s21 }
  0x2b   : > { %s146_s15 = scalar_lea.sflag [#allocation3], %s145_s11  ;;  %s1008_s24 = scalar_lea.hbm %s1182_s27, 128 }
  0x2c   : > { %p1009_p10 = scmp.ne.s32.totalorder %s1182_s27, %s1008_s24  ;;  %p1010_p11 = pneg %p1186_p7 }
  0x2d   : > { %s1013_s30 = scalar_lea.hbm %s1271_s0, 256  ;;  %p1014_p0 = scmp.lt.u32.totalorder %s1182_s27, %s1271_s0 }
  0x2e   : > { %p1011_p12 = pnand %p1010_p11, %p1009_p10  ;;  %p1015_p2 = scmp.lt.u32.totalorder %s1013_s30, %s1008_s24 }
  0x2f   : > { %p1017_p6 = scmp.lt.u32.totalorder %s1008_s24, %s1182_s27 }
  0x30   : > { %p1012_p13 = pneg %p1011_p12  ;;  %p1016_p3 = por %p1015_p2, %p1014_p0 }
  0x32   : > { %p1018_p8 = por %p1017_p6, %p1016_p3 }
  0x34   : > { %p1019_p9 = pnand %p1018_p8, %p1012_p13 }
  0x36   : > { %1022 = shalt.err (!%p1019_p9)
}
  0x37   : > { %s1023_s6 = scalar_lea.vmem %s1184_s21, 128  ;;  %s1081_s7 = smov [#allocation2]  }
  0x38   : > { %p1024_p1 = scmp.ne.s32.totalorder %s1184_s21, %s1023_s6  ;;  %s1028_s8 = sshll.u32 %s1081_s7, 4  ;;  %s1029_s8 = int_to_ptr.vmem [resolvable:$false] %s1028_s8 }
  0x39   : > { %s1030_s9 = scalar_lea.vmem %s1029_s8, 256  ;;  %p1031_p10 = scmp.lt.s32.totalorder %s1184_s21, %s1029_s8 }
  0x3a   : > { %p1026_p4 = pnand %p1024_p1, %p1010_p11  ;;  %p1032_p12 = scmp.lt.s32.totalorder %s1030_s9, %s1023_s6 }
  0x3c   : > { %p1027_p5 = pneg %p1026_p4  ;;  %p1033_p0 = por %p1032_p12, %p1031_p10 }
  0x3e   : > { %p1034_p2 = pnand %p1033_p0, %p1027_p5 }
  0x40   : > { %1037 = shalt.err (!%p1034_p2)
}
  0x41   : > { %938 = dma.hbm_to_vmem [thread:$0]  (!%p1186_p7), %s1182_s27, 128, %s1184_s21, %s146_s15  }
  0x42   : > { %p1282_p13 = scmp.ne.s32.totalorder %s1279_s18, 0 }
  0x43   : > { %s167_s11 = sand.u32 (!%p1282_p13), 1, %s1068_s13   ;;  %p1283_p11 = scmp.ne.s32.totalorder (!%p1282_p13), %s1278_s17, 0 }
  0x44   : > { %165 = sbr.rel (%p1282_p13) target bundleno = 332 (0x14c), region = 32  ;;  %s787_s12 = sshll.u32 (!%p1282_p13), %s167_s11, 3 }
  0x45   : > { %s168_s19 = scalar_lea.sflag (!%p1282_p13), [#allocation3], %s167_s11  ;;  %s171_s25 = scalar_lea.vmem (!%p1282_p13), [#allocation2], %s787_s12 }
  0x4b   : > { %1055 = dma.done.wait (%p1283_p11), %s168_s19, 128  }
  0x4c   : > { %1057 = vsyncadd (%p1283_p11), %s168_s19, 4294967168  ;;  %p1284_p3 = scmp.eq.s32.totalorder %s1124_s16, 0 }
  0x4e   : > { %1059 = dma.done.wait (%p1284_p3), [#allocation5], 512   ;;  %p1285_p6 = pmov %p1284_p3 }
  0x4f   : > { %v1082_v0 = vmov 0.0|0.0   ;;  %vm1083_vm0 = vmmov 0   ;;  %v1084_v1 = vmov 0.0   ;;  %vm206_vm1 = vcmask 261120   ;;  %v202_v2 = vld [vmem:[#allocation4] sm:$0xff]  ;;  %v203_v3 = vld [vmem:[#allocation4 + $0x8] sm:$0xff] }
  0x50   : > { %1061 = vsyncadd (%p1285_p6), [#allocation5], 4294966784  ;;  %889 = vmatprep.subr.bf16.mxu0 %v1082_v0  ;;  %895 = vmatprep.subr.bf16.mxu1 %v1082_v0  ;;  %v204_v4 = vld [vmem:[#allocation4 + $0x10] sm:$0xff]  ;;  %v211_v5 = vand.u32 4294901760, %v202_v2  ;;  %v214_v6 = vand.u32 4294901760, %v203_v3  ;;  %v205_v7 = vld [vmem:[#allocation4 + $0x18] sm:$0xff] }
  0x51   : > { %831 = vmatprep.mubr.msk.f32.mxu0 %vm1083_vm0, %v1084_v1  ;;  %842 = vmatprep.mubr.msk.f32.mxu1 %vm1083_vm0, %v1084_v1  ;;  %v217_v8 = vand.u32 4294901760, %v204_v4  ;;  %v201_v9 = vld [vmem:[%s171_s25] sm:$0xff]  ;;  %v220_v10 = vand.u32 4294901760, %v205_v7  ;;  %p197_p7 = scmp.lt.s32.totalorder %s1124_s16, 1  ;;  %v790_v56 = vld [vmem:[%s1273_s2] ss:$0 sm:$0xff] }
  0x52   : > { %v208_v11 = vsel %vm206_vm1, %v201_v9, 0  ;;  %v890_v12 = vpack.c.bf16 %v214_v6, %v211_v5  ;;  %v291_v13 = vsub.f32 %v202_v2, %v211_v5  ;;  %v298_v14 = vsub.f32 %v203_v3, %v214_v6 }
  0x53   : > { %v305_v15 = vsub.f32 %v204_v4, %v217_v8  ;;  %v312_v16 = vsub.f32 %v205_v7, %v220_v10  ;;  %v279_v17 = vand.u32 4294901760, %v208_v11  ;;  %v893_v18 = vpack.c.bf16 %v220_v10, %v217_v8  ;;  %s1291_s16 = smov (!%p197_p7, %s1124_s16), 1 }
  0x54   : > { %891 = vmatpush3.bf16.msra.mxu0 %v890_v12  ;;  %v292_v19 = vand.u32 4294901760, %v291_v13  ;;  %v299_v20 = vand.u32 4294901760, %v298_v14  ;;  %v902_v35 = vpack.c.bf16 %v298_v14, %v291_v13  ;;  %s789_s17 = sshll.u32 %s1291_s16, 3  ;;  %vm703_vm2 = vcmask 64512  }
  0x55   : > { %v306_v21 = vand.u32 4294901760, %v305_v15  ;;  %892 = vmatprep.subr.bf16.mxu0 %v1082_v0  ;;  %v280_v22 = vsub.f32 %v208_v11, %v279_v17  ;;  %v313_v23 = vand.u32 4294901760, %v312_v16  ;;  %v905_v38 = vpack.c.bf16 %v312_v16, %v305_v15  ;;  %s200_s21 = scalar_lea.vmem %s1274_s3, %s789_s17 }
  0x56   : > { %v293_v24 = vsub.f32 %v291_v13, %v292_v19  ;;  %v300_v25 = vsub.f32 %v298_v14, %v299_v20  ;;  %v914_v39 = vpack.c.bf16 %v299_v20, %v292_v19 }
  0x57   : > { %v307_v26 = vsub.f32 %v305_v15, %v306_v21  ;;  %v281_v27 = vand.u32 4294901760, %v280_v22  ;;  %v314_v28 = vsub.f32 %v312_v16, %v313_v23  ;;  %v917_v40 = vpack.c.bf16 %v313_v23, %v306_v21 }
  0x58   : > { %894 = vmatpush3.bf16.msra.mxu0 %v893_v18  ;;  %v294_v29 = vand.u32 4294901760, %v293_v24  ;;  %v301_v30 = vand.u32 4294901760, %v300_v25 }
  0x59   : > { %v308_v31 = vand.u32 4294901760, %v307_v26  ;;  %901 = vmatprep.subr.bf16.mxu0 %v1082_v0  ;;  %v282_v32 = vsub.f32 %v280_v22, %v281_v27  ;;  %v315_v33 = vand.u32 4294901760, %v314_v28 }
  0x5a   : > { %v896_v34 = vpack.c.bf16 %v301_v30, %v294_v29 }
  0x5b   : > { %v283_v36 = vand.u32 4294901760, %v282_v32  ;;  %v899_v37 = vpack.c.bf16 %v315_v33, %v308_v31 }
  0x5c   : > { %897 = vmatpush3.bf16.msra.mxu1 %v896_v34 }
  0x5d   : > { %832 = vmatmul.mubr.f32.vlgmr.msra.gmra.mrb[0].mxu0 %v283_v36  ;;  %898 = vmatprep.subr.bf16.mxu1 %v1082_v0 }
  0x5e   : > { %903 = vmatpush3.bf16.msra.mxu0 %v902_v35  ;;  %853 = vmatprep.mubr.msk.f32.mxu0 %vm1083_vm0, %v1084_v1 }
  0x5f   : > { %904 = vmatprep.subr.bf16.mxu0 %v1082_v0 }
  0x60   : > { %900 = vmatpush3.bf16.msra.mxu1 %v899_v37 }
  0x61   : > { %907 = vmatprep.subr.bf16.mxu1 %v1082_v0 }
  0x62   : > { %906 = vmatpush3.bf16.msra.mxu0 %v905_v38 }
  0x63   : > { %843 = vmatmul.mubr.f32.vlgmr.msra.gmra.mrb[0].mxu1 %v279_v17  ;;  %913 = vmatprep.subr.bf16.mxu0 %v1082_v0 }
  0x64   : > { %909 = vmatpush3.bf16.msra.mxu1 %v890_v12  ;;  %864 = vmatprep.mubr.msk.f32.mxu1 %vm1083_vm0, %v1084_v1 }
  0x65   : > { %854 = vmatmul.mubr.f32.vlgmr.msra.gmra.mrb[2].mxu0 %v280_v22  ;;  %910 = vmatprep.subr.bf16.mxu1 %v1082_v0 }
  0x66   : > { %915 = vmatpush3.bf16.msra.mxu0 %v914_v39  ;;  %875 = vmatprep.mubr.msk.f32.mxu0 %vm1083_vm0, %v1084_v1 }
  0x67   : > { %916 = vmatprep.subr.bf16.mxu0 %v1082_v0 }
  0x68   : > { %912 = vmatpush3.bf16.msra.mxu1 %v893_v18 }
  0x69   : > { %919 = vmatprep.subr.bf16.mxu1 %v1082_v0 }
  0x6a   : > { %918 = vmatpush3.bf16.msra.mxu0 %v917_v40 }
  0x6b   : > { %865 = vmatmul.mubr.f32.vlgmr.msra.gmra.mrb[2].mxu1 %v281_v27 }
  0x6c   : > { %921 = vmatpush3.bf16.msra.mxu1 %v890_v12  ;;  %886 = vmatprep.mubr.msk.f32.mxu1 %vm1083_vm0, %v1084_v1 }
  0x6d   : > { %876 = vmatmul.mubr.f32.vlgmr.msra.gmra.mrb[4].mxu0 %v279_v17  ;;  %922 = vmatprep.subr.bf16.mxu1 %v1082_v0 }
  0x70   : > { %924 = vmatpush3.bf16.msra.mxu1 %v893_v18 }
  0x73   : > { %887 = vmatmul.mubr.f32.vlgmr.msra.gmra.mrb[4].mxu1 %v279_v17 }
 0x130   : > { %v285_v41 = vpop.f32.mrb[0].mxu0 }
 0x131   : > { %v833_v42 = vpop.f32.mrb[1].mxu0 }
 0x136   : > { %v376_v43 = vpop.f32.mrb[0].mxu1 }
 0x137   : > { %v377_v44 = vadd.f32 %v376_v43, %v285_v41  ;;  %v844_v45 = vpop.f32.mrb[1].mxu1 }
 0x138   : > { %v456_v46 = vpop.f32.mrb[2].mxu0 }
 0x139   : > { %v457_v47 = vadd.f32 %v456_v46, %v377_v44  ;;  %v855_v48 = vpop.f32.mrb[3].mxu0 }
 0x13e   : > { %v533_v49 = vpop.f32.mrb[2].mxu1 }
 0x13f   : > { %v534_v50 = vadd.f32 %v533_v49, %v457_v47  ;;  %v866_v51 = vpop.f32.mrb[3].mxu1 }
 0x140   : > { %v616_v52 = vpop.f32.mrb[4].mxu0 }
 0x141   : > { %v617_v53 = vadd.f32 %v616_v52, %v534_v50  ;;  %v877_v54 = vpop.f32.mrb[5].mxu0 }
 0x146   : > { %v691_v55 = vpop.f32.mrb[4].mxu1 }
 0x147   : > { %v692_v57 = vadd.f32 %v691_v55, %v617_v53  ;;  %v888_v58 = vpop.f32.mrb[5].mxu1 }
 0x149   : > { %v702_v59 = vadd.f32 %v790_v56, %v692_v57 }
 0x14b   : > { %704 = vst.msk [vmem:[%s200_s21] sm:$0xff] %vm703_vm2, %v702_v59 }
 0x14c PF: > { %p14_p8 = scmp.ge.s32.totalorder %s1149_s22, 4   ;;  %s1286_s12 = smov %s1068_s13 }
 0x14d   : > { %s1287_s13 = smov %s1072_s14  ;;  %s1288_s14 = smov %s1175_s10 }
 0x14e   : > { %s1289_s15 = smov %s1149_s22  ;;  %16 = sbr.rel (!%p14_p8) target bundleno = 4 (0x4), region = 76 }
 0x155   :  { %724 = vsyncpa [#allocation3], 1 }
 0x156   :  { %726 = vsyncpa [#allocation3 + $0x1], 1 }
 0x157   :  { %727 = vsyncpa [#allocation5], 1 }

</bundles_post_ra>
